<compile_context>
chip_gen: v7x
topology: tpu7x:2x2x1
jax: 0.10.0
libtpu: 0.0.40
codegen_flags: <defaults>
</compile_context>

<pallas_src>
import functools

import numpy as np
import jax
import jax.numpy as jnp
from jax.experimental import pallas as pl
from jax.experimental.pallas import tpu as pltpu

_MIB = 1024 * 1024


def _round_up(x, m):
    return ((x + m - 1) // m) * m


@functools.lru_cache(maxsize=1)
def _chip_defaults():
    """Per-TPU-generation tile / VMEM defaults (roofline-driven)."""
    kind = ""
    try:
        kind = jax.devices()[0].device_kind.lower()
    except Exception:
        pass
    if "v7" in kind:
        # 64 MiB VMEM/TC; both TCs re-stream weights -> tm~512, small th, bf16 EW.
        return dict(tm=512, th=256, vmem=52 * _MIB, ew_dtype=jnp.bfloat16)
    if "v6" in kind:
        # 128 MiB VMEM; ~640-715 FLOPs/byte balance -> large token tile.
        return dict(tm=1024, th=512, vmem=100 * _MIB, ew_dtype=jnp.bfloat16)
    if "v5 lite" in kind or "v5e" in kind or "v5lite" in kind:
        # ~240 FLOPs/byte balance; no bf16 VPU/EUP -> f32 elementwise.
        return dict(tm=256, th=1024, vmem=96 * _MIB, ew_dtype=jnp.float32)
    if "v5" in kind or "v4" in kind:
        return dict(tm=512, th=512, vmem=96 * _MIB, ew_dtype=jnp.float32)
    # Unknown chip: conservative defaults that fit any current VMEM size.
    return dict(tm=256, th=512, vmem=48 * _MIB, ew_dtype=jnp.float32)


def choose_hidden_tile(H, want=None):
    """Hidden tile: multiple of 128, <= round_up(H,128), independent of H's factors."""
    if want is None:
        want = _chip_defaults()["th"]
    th = min(int(want), _round_up(H, 128))
    th = max(128, (th // 128) * 128)
    return th


def pack_ffn_weights(w1, w3, w2, *, th=None, compute_dtype=jnp.bfloat16):
    """Pack gate/up weights once: (n_th, C, 2*th) = [w1_tile | w3_tile].

    Zero-pads H up to a multiple of th (padded gate/up columns give
    silu(0)*0 = 0 and padded w2 rows are 0, so the result is unchanged).
    Call this ONCE at weight-load time, not per forward call.
    """
    C, H = w1.shape
    assert w3.shape == (C, H) and w2.shape == (H, C)
    if th is None:
        th = choose_hidden_tile(H)
    Hp = _round_up(H, th)
    if Hp != H:
        pad = Hp - H
        w1 = jnp.pad(w1, ((0, 0), (0, pad)))
        w3 = jnp.pad(w3, ((0, 0), (0, pad)))
        w2 = jnp.pad(w2, ((0, pad), (0, 0)))
    n_th = Hp // th
    w13 = jnp.concatenate(
        [w1.reshape(C, n_th, th), w3.reshape(C, n_th, th)], axis=-1)
    w13 = jnp.transpose(w13, (1, 0, 2)).astype(compute_dtype)
    return w13, w2.astype(compute_dtype)


def _ffn_kernel(x_ref, w13_ref, w2_ref, o_ref, *scratch,
                compute_dtype, ew_dtype, use_acc):
    # x_ref  : (tm, C)      activations (any float dtype; cast in-kernel)
    # w13_ref: (C, 2*th)    packed bf16 [gate | up] weight tile for H-tile j
    # w2_ref : (th, C)      bf16 down-projection tile for H-tile j
    # o_ref  : (tm, C)      output tile, resident across the H axis
    # scratch: optional (tm, C) f32 accumulator (only when o_ref is not f32)
    acc_ref = scratch[0] if use_acc else o_ref
    j = pl.program_id(1)

    @pl.when(j == 0)
    def _init():
        acc_ref[...] = jnp.zeros_like(acc_ref)

    th = w2_ref.shape[0]
    xb = x_ref[...].astype(compute_dtype)

    # Fused gate+up projection: one MXU GEMM, f32 accumulation.
    h = jnp.dot(xb, w13_ref[...], preferred_element_type=jnp.float32)
    h = h.astype(ew_dtype)
    h1 = h[:, :th]          # gate
    h3 = h[:, th:]          # up

    # SiLU(gate) * up.  bf16 on v6e/v7x (bf16 VPU/EUP), f32 on v5e.
    gated = (h1 * jax.nn.sigmoid(h1)) * h3

    # Down projection for this H tile; accumulate over H tiles in f32.
    acc_ref[...] += jnp.dot(gated.astype(compute_dtype), w2_ref[...],
                            preferred_element_type=jnp.float32)

    if use_acc:
        @pl.when(j == pl.num_programs(1) - 1)
        def _finalize():
            o_ref[...] = acc_ref[...].astype(o_ref.dtype)


def feed_forward_packed(x, w13, w2c, *, tm=None, out_dtype=jnp.bfloat16,
                        ew_dtype=None, vmem_limit_bytes=None):
    """SwiGLU FFN with pre-packed weights.  x: (B, T, C) -> (B, T, C)."""
    B, T, C = x.shape
    n_th, Cw, two_th = w13.shape
    th = two_th // 2
    assert Cw == C and two_th == 2 * th
    assert w2c.shape == (n_th * th, C)
    compute_dtype = w13.dtype

    cfg = _chip_defaults()
    if tm is None:
        tm = cfg["tm"]
    if ew_dtype is None:
        ew_dtype = cfg["ew_dtype"]
    if vmem_limit_bytes is None:
        vmem_limit_bytes = cfg["vmem"]

    M = B * T
    use_acc = np.dtype(out_dtype) != np.dtype(jnp.float32)

    # Token tile: multiple of 16 (bf16 packs 16 rows per vreg sublane group).
    tm = max(16, min(int(tm), _round_up(M, 16)))
    tm = _round_up(tm, 16)

    # Shrink tm until the double-buffered working set fits the VMEM budget.
    x_bytes = np.dtype(x.dtype).itemsize
    o_bytes = np.dtype(out_dtype).itemsize
    w_bytes = np.dtype(compute_dtype).itemsize
    budget = int(0.85 * vmem_limit_bytes)

    def _vmem_est(tm_):
        wgt = (C * two_th + th * C) * w_bytes * 2                 # 2 weight inputs, double-buffered
        act = tm_ * C * (2 * x_bytes + 2 * o_bytes + (4 if use_acc else 0))
        return wgt + act

    while tm > 16 and _vmem_est(tm) > budget:
        tm = max(16, _round_up(tm // 2, 16))

    grid = (pl.cdiv(M, tm), n_th)   # (parallel token tiles, arbitrary H tiles)
    kernel = functools.partial(_ffn_kernel, compute_dtype=compute_dtype,
                               ew_dtype=ew_dtype, use_acc=use_acc)
    scratch = (pltpu.VMEM((tm, C), jnp.float32),) if use_acc else ()

    out = pl.pallas_call(
        kernel,
        out_shape=jax.ShapeDtypeStruct((M, C), out_dtype),
        grid=grid,
        in_specs=[
            pl.BlockSpec((tm, C), lambda i, j: (i, 0)),                # x tile
            pl.BlockSpec((None, C, two_th), lambda i, j: (j, 0, 0)),   # fused [w1|w3]
            pl.BlockSpec((th, C), lambda i, j: (j, 0)),                # w2 tile
        ],
        out_specs=pl.BlockSpec((tm, C), lambda i, j: (i, 0)),
        scratch_shapes=scratch,
        compiler_params=pltpu.CompilerParams(
            dimension_semantics=("parallel", "arbitrary"),
            vmem_limit_bytes=int(vmem_limit_bytes),
        ),
    )(x.reshape(M, C), w13, w2c)

    return out.reshape(B, T, C)


def feed_forward(x, w1, w3, w2, *, th=None, compute_dtype=jnp.bfloat16, **kwargs):
    """Convenience path that packs weights per call.

    For serving/decode, pack once with pack_ffn_weights() and use
    feed_forward_packed() so the repack/cast is not on the hot path.
    """
    w13, w2c = pack_ffn_weights(w1, w3, w2, th=th, compute_dtype=compute_dtype)
    return feed_forward_packed(x, w13, w2c, **kwargs)


def feed_forward_ref(x, w1, w3, w2):
    h1 = x @ w1
    h3 = x @ w3
    return (jax.nn.silu(h1) * h3) @ w2


if __name__ == "__main__":
    # Small shapes consistent with the module: n_embd=32 -> hidden=128.
    B, T, C = 2, 8, 32
    H = 4 * C

    key = jax.random.PRNGKey(0)
    kx, k1, k2, k3 = jax.random.split(key, 4)

    x = jax.random.normal(kx, (B, T, C), dtype=jnp.float32)
    w1 = jax.random.normal(k1, (C, H), dtype=jnp.float32) * (1.0 / C ** 0.5)
    w3 = jax.random.normal(k3, (C, H), dtype=jnp.float32) * (1.0 / C ** 0.5)
    w2 = jax.random.normal(k2, (H, C), dtype=jnp.float32) * (1.0 / H ** 0.5)
    # TODO(synk): config.bias=True variant would add bias adds in-kernel; omitted (LLaMA uses bias=False).

    # Pack gate/up/down weights ONCE (hoisted out of the per-call path).
    w13, w2c = pack_ffn_weights(w1, w3, w2)

    # Default path: bf16 output with an f32 VMEM accumulator.
    y = feed_forward_packed(x, w13, w2c)
    jax.block_until_ready(y)
    y_ref = feed_forward_ref(x, w1, w3, w2)
    assert y.shape == (B, T, C)
    max_err = float(jnp.max(jnp.abs(y.astype(jnp.float32) - y_ref)))
    # bf16 GEMMs / elementwise / output -> loosened tolerance vs f32 reference.
    assert jnp.allclose(y.astype(jnp.float32), y_ref, atol=1e-1, rtol=1e-1), (
        f"mismatch vs reference (max abs err {max_err})")

    # Ragged-M path (M=15: partial last token tile, no wrapper jnp.pad) with
    # f32 output + f32 elementwise -> accumulates directly into o_ref (no scratch).
    x2 = jax.random.normal(jax.random.PRNGKey(1), (3, 5, C), dtype=jnp.float32)
    y2 = feed_forward_packed(x2, w13, w2c, out_dtype=jnp.float32,
                             ew_dtype=jnp.float32)
    jax.block_until_ready(y2)
    y2_ref = feed_forward_ref(x2, w1, w3, w2)
    assert y2.shape == (3, 5, C)
    assert jnp.allclose(y2, y2_ref, atol=5e-2, rtol=5e-2), "mismatch on ragged path"

    print("KERNEL_OK")
</pallas_src>

<mosaic_0001>
module attributes {stable_mosaic.version = 11 : i64} {
  func.func @_ffn_kernel(%arg0: i32, %arg1: i32, %arg2: memref<16x32xf32, #tpu.memory_space<vmem>>, %arg3: memref<1x32x256xbf16, #tpu.memory_space<vmem>>, %arg4: memref<128x32xbf16, #tpu.memory_space<vmem>>, %arg5: memref<16x32xbf16, #tpu.memory_space<vmem>>, %arg6: memref<16x32xf32, #tpu.memory_space<vmem>>) attributes {dimension_semantics = [#tpu.dimension_semantics<parallel>, #tpu.dimension_semantics<arbitrary>], iteration_bounds = array<i64: 1, 1>, scalar_prefetch = 0 : i64, scratch_operands = 1 : i64, tpu.core_type = #tpu.core_type<tc>, window_params = [{transform_indices = @transform_0, window_bounds = array<i64: 16, 32>}, {transform_indices = @transform_1, window_bounds = array<i64: 1, 32, 256>}, {transform_indices = @transform_2, window_bounds = array<i64: 128, 32>}, {transform_indices = @transform_3, window_bounds = array<i64: 16, 32>}]} {
    %c0_i32 = arith.constant 0 : i32
    %0 = arith.cmpi eq, %arg1, %c0_i32 : i32
    %1 = arith.extui %0 : i1 to i32
    %c0_i32_0 = arith.constant 0 : i32
    %2 = arith.cmpi ne, %1, %c0_i32_0 : i32
    scf.if %2 {
      %cst_15 = arith.constant 0.000000e+00 : f32
      %26 = vector.broadcast %cst_15 : f32 to vector<16x32xf32>
      %c0_16 = arith.constant 0 : index
      %c0_17 = arith.constant 0 : index
      %27 = vector.load %arg6[%c0_16, %c0_17] : memref<16x32xf32, #tpu.memory_space<vmem>>, vector<16x32xf32>
      tpu.vector_store %arg6[%c0_16, %c0_17], %26 {strides = array<i32>} : memref<16x32xf32, #tpu.memory_space<vmem>>, vector<16x32xf32>,
    } else {
    }
    %c0 = arith.constant 0 : index
    %c0_1 = arith.constant 0 : index
    %3 = vector.load %arg2[%c0, %c0_1] : memref<16x32xf32, #tpu.memory_space<vmem>>, vector<16x32xf32>
    %4 = arith.truncf %3 : vector<16x32xf32> to vector<16x32xbf16>
    %c0_2 = arith.constant 0 : index
    %c0_3 = arith.constant 0 : index
    %c0_4 = arith.constant 0 : index
    %5 = vector.load %arg3[%c0_2, %c0_3, %c0_4] : memref<1x32x256xbf16, #tpu.memory_space<vmem>>, vector<1x32x256xbf16>
    %6 = vector.shape_cast %5 : vector<1x32x256xbf16> to vector<32x256xbf16>
    %cst = arith.constant dense<0.000000e+00> : vector<16x256xf32>
    %7 = tpu.matmul %4, %6, %cst {dimension_numbers = #tpu.dot_dimension_numbers<[1], [0], [0], [1], [0, 0, 1, 1], [], []>} : vector<16x32xbf16>, vector<32x256xbf16>, vector<16x256xf32> -> vector<16x256xf32>
    %8 = vector.extract_strided_slice %7 {offsets = [0, 0], sizes = [16, 128], strides = [1, 1]} : vector<16x256xf32> to vector<16x128xf32>
    %9 = vector.extract_strided_slice %7 {offsets = [0, 128], sizes = [16, 128], strides = [1, 1]} : vector<16x256xf32> to vector<16x128xf32>
    %10 = arith.negf %8 : vector<16x128xf32>
    %11 = math.exp %10 : vector<16x128xf32>
    %cst_5 = arith.constant 1.000000e+00 : f32
    %12 = vector.broadcast %cst_5 : f32 to vector<16x128xf32>
    %13 = arith.addf %12, %11 : vector<16x128xf32>
    %14 = arith.divf %12, %13 : vector<16x128xf32>
    %15 = arith.mulf %8, %14 : vector<16x128xf32>
    %16 = arith.mulf %15, %9 : vector<16x128xf32>
    %c0_6 = arith.constant 0 : index
    %c0_7 = arith.constant 0 : index
    %17 = vector.load %arg6[%c0_6, %c0_7] : memref<16x32xf32, #tpu.memory_space<vmem>>, vector<16x32xf32>
    %18 = arith.truncf %16 : vector<16x128xf32> to vector<16x128xbf16>
    %c0_8 = arith.constant 0 : index
    %c0_9 = arith.constant 0 : index
    %19 = vector.load %arg4[%c0_8, %c0_9] : memref<128x32xbf16, #tpu.memory_space<vmem>>, vector<128x32xbf16>
    %cst_10 = arith.constant dense<0.000000e+00> : vector<16x32xf32>
    %20 = tpu.matmul %18, %19, %cst_10 {dimension_numbers = #tpu.dot_dimension_numbers<[1], [0], [0], [1], [0, 0, 1, 1], [], []>} : vector<16x128xbf16>, vector<128x32xbf16>, vector<16x32xf32> -> vector<16x32xf32>
    %21 = arith.addf %17, %20 : vector<16x32xf32>
    %c0_11 = arith.constant 0 : index
    %c0_12 = arith.constant 0 : index
    %22 = vector.load %arg6[%c0_11, %c0_12] : memref<16x32xf32, #tpu.memory_space<vmem>>, vector<16x32xf32>
    tpu.vector_store %arg6[%c0_11, %c0_12], %21 {strides = array<i32>} : memref<16x32xf32, #tpu.memory_space<vmem>>, vector<16x32xf32>,
    %c0_i32_13 = arith.constant 0 : i32
    %23 = arith.cmpi eq, %arg1, %c0_i32_13 : i32
    %24 = arith.extui %23 : i1 to i32
    %c0_i32_14 = arith.constant 0 : i32
    %25 = arith.cmpi ne, %24, %c0_i32_14 : i32
    scf.if %25 {
      %c0_15 = arith.constant 0 : index
      %c0_16 = arith.constant 0 : index
      %26 = vector.load %arg6[%c0_15, %c0_16] : memref<16x32xf32, #tpu.memory_space<vmem>>, vector<16x32xf32>
      %27 = arith.truncf %26 : vector<16x32xf32> to vector<16x32xbf16>
      %c0_17 = arith.constant 0 : index
      %c0_18 = arith.constant 0 : index
      %28 = vector.load %arg5[%c0_17, %c0_18] : memref<16x32xbf16, #tpu.memory_space<vmem>>, vector<16x32xbf16>
      tpu.vector_store %arg5[%c0_17, %c0_18], %27 {strides = array<i32>} : memref<16x32xbf16, #tpu.memory_space<vmem>>, vector<16x32xbf16>,
    } else {
    }
    return
  }
  func.func @transform_0(%arg0: i32, %arg1: i32) -> (i32, i32) {
    %c0_i32 = arith.constant 0 : i32
    %c0_i32_0 = arith.constant 0 : i32
    return %arg0, %c0_i32 : i32, i32
  }
  func.func @transform_1(%arg0: i32, %arg1: i32) -> (i32, i32, i32) {
    %c0_i32 = arith.constant 0 : i32
    %c0_i32_0 = arith.constant 0 : i32
    %c0_i32_1 = arith.constant 0 : i32
    return %arg1, %c0_i32, %c0_i32_0 : i32, i32, i32
  }
  func.func @transform_2(%arg0: i32, %arg1: i32) -> (i32, i32) {
    %c0_i32 = arith.constant 0 : i32
    %c0_i32_0 = arith.constant 0 : i32
    return %arg1, %c0_i32 : i32, i32
  }
  func.func @transform_3(%arg0: i32, %arg1: i32) -> (i32, i32) {
    %c0_i32 = arith.constant 0 : i32
    %c0_i32_0 = arith.constant 0 : i32
    return %arg0, %c0_i32 : i32, i32
  }
}

</mosaic_0001>

<bundles_post_ra>
// kernel: tpu_custom_call.1
= control target key start
LH: loop header
LB: loop body
LE: loop exit
PB: predicated region body
PF: predicated region fallthrough
CT: control target
= control target key end

     0   :  { %v357_v2 = vmov 0   ;;  %vm20_vm0 = vcmask 261120   ;;  %s442_s0 = inlined_call_operand.vmem [shape: f32[16,32], index: 0, kind: input, shape index: {}]   ;;  %s443_s1 = inlined_call_operand.vmem [shape: bf16[1,32,256], index: 1, kind: input, shape index: {}]   ;;  %s444_s2 = inlined_call_operand.vmem [shape: bf16[128,32], index: 2, kind: input, shape index: {}]   ;;  %s445_s3 = inlined_call_operand.hbm [shape: bf16[16,32], index: 3, kind: output, shape index: {}]  }
   0x1   :  { %v311_v0 = vld [vmem:[%s443_s1 + $0x4] ss:$8 sps:$4 sm:$0xff]   ;;  %v313_v1 = vld [vmem:[%s443_s1] ss:$8 sps:$4 sm:$0xff]   ;;  %86 = vmatprep.mubr.bf16.mxu0 %v357_v2  ;;  %v314_v3 = vld [vmem:[%s443_s1 + $0x14] ss:$8 sps:$4 sm:$0xff]  }
   0x2   :  { %54 = vmatprep.subr.bf16.mxu0 %v311_v0  ;;  %v316_v4 = vld [vmem:[%s443_s1 + $0x10] ss:$8 sps:$4 sm:$0xff]   ;;  %v23_v5 = vld [vmem:[%s442_s0] sm:$0xff]  ;;  %v24_v6 = vld [vmem:[%s442_s0 + $0x8] sm:$0xff] }
   0x3   :  { %55 = vmatpush1.bf16.msra.mxu0 %v313_v1  ;;  %v25_v7 = vpack.c.bf16 %v24_v6, %v23_v5 }
   0x4   :  { %56 = vmatprep.subr.bf16.mxu0 %v314_v3 }
   0x7   :  { %57 = vmatpush1.bf16.msra.mxu0 %v316_v4 }
   0x8   :  { %8 = vsyncpa [#allocation4], 0  ;;  %v317_v8 = vld [vmem:[%s444_s2] sm:$0xff]   ;;  %v358_v9 = vmov 0.0   ;;  %v318_v10 = vld [vmem:[%s444_s2 + $0x8] sm:$0xff]   ;;  %vm359_vm1 = vmmov 0  }
   0x9   :  { %285 = vmatprep.subr.bf16.mxu1 %v358_v9  ;;  %21 = vst.msk [vmem:[#allocation2] sm:$0xff] %vm20_vm0, %v358_v9  ;;  %22 = vst.msk [vmem:[#allocation2 + $0x8] sm:$0xff] %vm20_vm0, %v358_v9  ;;  %v319_v11 = vld [vmem:[%s444_s2 + $0x10] sm:$0xff]   ;;  %v320_v12 = vld [vmem:[%s444_s2 + $0x18] sm:$0xff]   ;;  %301 = vmatprep.mubr.msk.bf16.mxu1 %vm359_vm1, %v358_v9  ;;  %vm238_vm2 = vcmask 257024  }
   0xa   :  { %261 = vmatmul.mubr.msk.bf16.vlgmr.msra.gmra.mrb[0].mxu0 %vm20_vm0, %v25_v7  ;;  %286 = vmatpush3.bf16.msra.mxu1 %v317_v8  ;;  %v321_v13 = vld [vmem:[%s444_s2 + $0x20] sm:$0xff]   ;;  %v322_v14 = vld [vmem:[%s444_s2 + $0x28] sm:$0xff]   ;;  %v323_v15 = vld [vmem:[%s444_s2 + $0x30] sm:$0xff]  }
   0xb   :  { %287 = vmatprep.subr.bf16.mxu1 %v358_v9  ;;  %v324_v16 = vld [vmem:[%s444_s2 + $0x38] sm:$0xff]   ;;  %s360_s2 = smov [#allocation3]  }
   0xc   :  { %s246_s11 = sshll.u32 %s360_s2, 4  ;;  %s247_s11 = int_to_ptr.vmem [resolvable:$true] %s246_s11 }
   0xd   :  { %s333_s12 = scalar_lea.vmem %s247_s11, 128  ;;  %p338_p1 = scmp.lt.s32.totalorder %s247_s11, %s247_s11 }
   0xe   :  { %288 = vmatpush3.bf16.msra.mxu1 %v318_v10  ;;  %p334_p0 = scmp.ne.s32.totalorder %s247_s11, %s333_s12  ;;  %p339_p2 = scmp.lt.s32.totalorder %s333_s12, %s333_s12 }
   0xf   :  { %289 = vmatprep.subr.bf16.mxu1 %v358_v9 }
  0x10   :  { %v113_v34 = vld [vmem:[#allocation2] sm:$0xff]  ;;  %v114_v36 = vld [vmem:[#allocation2 + $0x8] sm:$0xff]  ;;  %p340_p3 = por %p339_p2, %p338_p1 }
  0x12   :  { %290 = vmatpush3.bf16.msra.mxu1 %v319_v11  ;;  %p341_p4 = pnand %p340_p3, %p334_p0 }
  0x13   :  { %291 = vmatprep.subr.bf16.mxu1 %v358_v9 }
  0x16   :  { %292 = vmatpush3.bf16.msra.mxu1 %v320_v12 }
  0x17   :  { %293 = vmatprep.subr.bf16.mxu1 %v358_v9 }
  0x1a   :  { %294 = vmatpush3.bf16.msra.mxu1 %v321_v13 }
  0x1b   :  { %295 = vmatprep.subr.bf16.mxu1 %v358_v9 }
  0x1e   :  { %296 = vmatpush3.bf16.msra.mxu1 %v322_v14 }
  0x1f   :  { %297 = vmatprep.subr.bf16.mxu1 %v358_v9 }
  0x22   :  { %298 = vmatpush3.bf16.msra.mxu1 %v323_v15 }
  0x23   :  { %299 = vmatprep.subr.bf16.mxu1 %v358_v9 }
  0x26   :  { %300 = vmatpush3.bf16.msra.mxu1 %v324_v16 }
  0xdd   :  { %v88_v17 = vpop.f32.mrb[0].mxu0 }
  0xde   :  { %v262_v18 = vmul.f32 -1.442695, %v88_v17  ;;  %v90_v19 = vpop.f32.mrb[1].mxu0 }
  0xdf   :  { %v92_v20 = vpop.f32.mrb[2].mxu0 }
  0xe0   :  { %325 = vpow2.f32 %v262_v18  ;;  %v263_v21 = vmul.f32 -1.442695, %v92_v20  ;;  %v94_v22 = vpop.f32.mrb[3].mxu0 }
  0xe2   :  { %327 = vpow2.f32 %v263_v21 }
  0xea   :  { %v326_v23 = vpop.eup %325 }
  0xeb   :  { %v103_v24 = vadd.f32 1.0, %v326_v23 }
  0xec   :  { %v328_v25 = vpop.eup %327 }
  0xed   :  { %329 = vrcp.f32 %v103_v24  ;;  %v104_v26 = vadd.f32 1.0, %v328_v25 }
  0xef   :  { %331 = vrcp.f32 %v104_v26 }
  0xf7   :  { %v330_v27 = vpop.eup %329 }
  0xf8   :  { %v109_v28 = vmul.f32 %v330_v27, %v88_v17 }
  0xf9   :  { %v332_v29 = vpop.eup %331 }
  0xfa   :  { %v111_v30 = vmul.f32 %v109_v28, %v90_v19  ;;  %v110_v31 = vmul.f32 %v332_v29, %v92_v20 }
  0xfc   :  { %v112_v32 = vmul.f32 %v110_v31, %v94_v22 }
  0xfe   :  { %v115_v33 = vpack.c.bf16 %v112_v32, %v111_v30 }
 0x100   :  { %302 = vmatmul.mubr.bf16.vlgmr.msra.gmra.mrb[0].mxu1 %v115_v33 }
 0x1d3   :  { %v214_v35 = vpop.f32.mrb[0].mxu1 }
 0x1d4   :  { %v221_v37 = vadd.f32 %v214_v35, %v113_v34  ;;  %v303_v38 = vpop.f32.mrb[1].mxu1 }
 0x1d5   :  { %v217_v39 = vpop.f32.mrb[2].mxu1 }
 0x1d6   :  { %223 = vst.msk [vmem:[#allocation2] sm:$0xff] %vm20_vm0, %v221_v37  ;;  %v222_v40 = vadd.f32 %v217_v39, %v114_v36  ;;  %v304_v41 = vpop.f32.mrb[3].mxu1 }
 0x1d8   :  { %224 = vst.msk [vmem:[#allocation2 + $0x8] sm:$0xff] %vm20_vm0, %v222_v40 }
 0x1dd   :  { %v228_v42 = vld [vmem:[#allocation2] sm:$0xff] }
 0x1de   :  { %v274_v43 = vpack.c.bf16 %v228_v42, %v228_v42 }
 0x1df   :  { %v229_v44 = vld [vmem:[#allocation2 + $0x8] sm:$0xff] }
 0x1e0   :  { %v275_v45 = vpack.c.bf16 %v229_v44, %v229_v44  ;;  %239 = vst.msk [vmem:[#allocation3] sm:$0xf] %vm238_vm2, %v274_v43 }
 0x1e2   :  { %240 = vst.msk [vmem:[#allocation3 + $0x4] sm:$0xf] %vm238_vm2, %v275_v45 }
 0x1e3   :  { %344 = shalt.err (!%p341_p4)
}
 0x1e4   :  { %s345_s15 = scalar_lea.hbm %s445_s3, 128 }
 0x1e5   :  { %p346_p5 = scmp.ne.s32.totalorder %s445_s3, %s345_s15  ;;  %p349_p6 = scmp.lt.u32.totalorder %s345_s15, %s445_s3 }
 0x1e7   :  { %p351_p7 = pnand %p349_p6, %p346_p5 }
 0x1e9   :  { %354 = shalt.err (!%p351_p7)
}
 0x1ea   :  { %s361_s20 = smov 64   ;;  %s362_s21 = smov 4  }
 0x1eb   :  { %252 = dma.vmem_to_hbm [thread:$0]  %s247_s11, 128, %s445_s3, [#allocation4], %s361_s20, %s361_s20, %s362_s21  }
 0x1ec   :  { %355 = dma.done.wait [#allocation4], 128  }
 0x1ed   :  { %356 = vsyncadd [#allocation4], 4294967168 }
 0x1ee   :  { %256 = vsyncpa [#allocation4], 1 }

</bundles_post_ra>
